<compile_context>
chip_gen: v7x
topology: tpu7x:2x2x1
jax: 0.10.0
libtpu: 0.0.40
codegen_flags: <defaults>
</compile_context>

<pallas_src>
import jax
import jax.numpy as jnp
from jax.experimental import pallas as pl
from jax.experimental.pallas import tpu as pltpu

_LANES = 128
_TARGET_TILE_BYTES = 4 << 20   # ~4 MiB streamed input tile
_VMEM_LIMIT_BYTES = 48 << 20   # 2x(in+out) + f32 temps; < v7x 64 MiB physical


def _sublane_min(dtype) -> int:
    """Minimum sublane tiling for the dtype (8 for 4-byte, 16 for 2-byte, 32 for 1-byte)."""
    itemsize = jnp.dtype(dtype).itemsize
    if itemsize >= 4:
        return 8
    if itemsize == 2:
        return 16
    return 32


def _make_qcfs_kernel(q_max: float):
    """Q is folded as a compile-time constant; only scale/inv_scale are runtime scalars."""

    def kernel(scales_ref, x_ref, o_ref):
        # scales_ref: SMEM (2,) f32 -> [Q / v_th, v_th / Q]
        scale = scales_ref[0]
        inv_scale = scales_ref[1]
        x = x_ref[...].astype(jnp.float32)
        y = jnp.floor(x * scale + 0.5)      # floor_ste forward == floor
        y = jnp.clip(y, 0.0, q_max)         # clamp(y, 0, Q), Q is a literal
        o_ref[...] = (y * inv_scale).astype(o_ref.dtype)

    return kernel


def qcfs_forward(x, v_th, Q: int):
    """QCFS activation. x: any shape / float dtype. v_th: scalar. Q: static int."""
    orig_shape = x.shape
    dtype = x.dtype
    flat = x.reshape(-1)
    n = flat.shape[0]
    if n == 0:
        return x

    # Hoist the per-element divides: two scalars, two in-kernel multiplies.
    vt = jnp.asarray(v_th, jnp.float32)
    scales = jnp.stack([jnp.float32(Q) / vt, vt / jnp.float32(Q)]).astype(jnp.float32)

    tail = n % _LANES            # true <128-element remainder (rare)
    main_n = n - tail

    pieces = []
    if main_n:
        rows = main_n // _LANES
        x2d = (flat if tail == 0 else flat[:main_n]).reshape(rows, _LANES)

        subl = _sublane_min(dtype)
        itemsize = jnp.dtype(dtype).itemsize

        # ~4 MiB input tile, rounded to the sublane tiling.
        target_rows = max(subl, _TARGET_TILE_BYTES // (_LANES * itemsize))
        target_rows = (target_rows // subl) * subl

        # Cap the tile so the grid has >= 4 (or at least 2) steps when the
        # tensor is big enough: lets v7x shard the parallel axis across its
        # 2 TensorCores; a no-op cost on single-TC v5e/v6e.
        quarter = ((rows // 4) // subl) * subl
        half = ((rows // 2) // subl) * subl
        if quarter >= subl:
            target_rows = min(target_rows, quarter)
        elif half >= subl:
            target_rows = min(target_rows, half)

        rows_up = ((rows + subl - 1) // subl) * subl
        block_rows = max(subl, min(target_rows, rows_up))
        grid = (pl.cdiv(rows, block_rows),)   # ragged last block handled by Pallas

        out2d = pl.pallas_call(
            _make_qcfs_kernel(float(Q)),
            out_shape=jax.ShapeDtypeStruct((rows, _LANES), dtype),
            grid=grid,
            in_specs=[
                pl.BlockSpec(memory_space=pltpu.SMEM),                  # [scale, inv_scale]
                pl.BlockSpec((block_rows, _LANES), lambda i: (i, 0)),   # x tile (native dtype)
            ],
            out_specs=pl.BlockSpec((block_rows, _LANES), lambda i: (i, 0)),
            compiler_params=pltpu.CompilerParams(
                dimension_semantics=("parallel",),       # megacore-shardable on v7x
                vmem_limit_bytes=_VMEM_LIMIT_BYTES,
            ),
        )(scales, x2d)
        pieces.append(out2d.reshape(-1))

    if tail:
        # Tiny remainder (<128 elements): plain jnp on the tail only.
        t = flat[main_n:].astype(jnp.float32)
        yt = jnp.clip(jnp.floor(t * scales[0] + 0.5), 0.0, float(Q))
        pieces.append((yt * scales[1]).astype(dtype))

    out_flat = pieces[0] if len(pieces) == 1 else jnp.concatenate(pieces)
    return out_flat.reshape(orig_shape)

# TODO(synk): in a full model, fuse QCFS into the producer's (conv/matmul) epilogue
# tile while it is still in VMEM instead of paying a standalone HBM round trip.


def qcfs_reference(x, v_th, Q: int):
    xf = x.astype(jnp.float32)
    y = jnp.floor(xf * Q / v_th + 0.5)
    y = jnp.clip(y, 0.0, float(Q))
    return (y * v_th / Q).astype(x.dtype)


if __name__ == "__main__":
    Q = 4
    # Deterministic parameter init, matching nn.Parameter(torch.tensor(float(Q)))
    v_th = jnp.float32(float(Q))

    key = jax.random.PRNGKey(0)
    k1, k2, k3 = jax.random.split(key, 3)

    # 1) NCHW activation, divisible by 128 (roofline path: no pad, no slice, no concat).
    x1 = jax.random.normal(k1, (2, 4, 16, 16), dtype=jnp.float32) * 2.0
    # 2) rows not a multiple of block_rows -> exercises the ragged/masked last block.
    x2 = jax.random.normal(k2, (3, 5, 16, 16), dtype=jnp.float32) * 2.0
    # 3) n % 128 != 0 -> exercises the tiny out-of-kernel tail path.
    x3 = jax.random.normal(k3, (7, 11, 5), dtype=jnp.float32) * 2.0
    # 4) bf16 I/O -> exercises the 16-sublane tiling / in-kernel f32 cast.
    x4 = x1.astype(jnp.bfloat16)

    for x in (x1, x2, x3, x4):
        out = jax.block_until_ready(qcfs_forward(x, v_th, Q))
        ref = qcfs_reference(x, v_th, Q)
        assert out.shape == x.shape and out.dtype == x.dtype
        assert jnp.allclose(out.astype(jnp.float32), ref.astype(jnp.float32),
                            atol=1e-5, rtol=1e-5), f"mismatch vs reference for shape {x.shape}"

    print("KERNEL_OK")
</pallas_src>

<mosaic_0001>
module attributes {stable_mosaic.version = 11 : i64} {
  func.func @kernel(%arg0: i32, %arg1: memref<2xf32, #tpu.memory_space<smem>>, %arg2: memref<8x128xf32, #tpu.memory_space<vmem>>, %arg3: memref<8x128xf32, #tpu.memory_space<vmem>>) attributes {dimension_semantics = [#tpu.dimension_semantics<parallel>], iteration_bounds = array<i64: 2>, scalar_prefetch = 0 : i64, scratch_operands = 0 : i64, tpu.core_type = #tpu.core_type<tc>, window_params = [{transform_indices = @transform_0, window_bounds = array<i64: 2>}, {transform_indices = @transform_1, window_bounds = array<i64: 8, 128>}, {transform_indices = @transform_2, window_bounds = array<i64: 8, 128>}]} {
    %c0 = arith.constant 0 : index
    %0 = memref.load %arg1[%c0] : memref<2xf32, #tpu.memory_space<smem>>
    %c1 = arith.constant 1 : index
    %1 = memref.load %arg1[%c1] : memref<2xf32, #tpu.memory_space<smem>>
    %c0_0 = arith.constant 0 : index
    %c0_1 = arith.constant 0 : index
    %2 = vector.load %arg2[%c0_0, %c0_1] : memref<8x128xf32, #tpu.memory_space<vmem>>, vector<8x128xf32>
    %3 = vector.broadcast %0 : f32 to vector<8x128xf32>
    %4 = arith.mulf %2, %3 : vector<8x128xf32>
    %cst = arith.constant 5.000000e-01 : f32
    %5 = vector.broadcast %cst : f32 to vector<8x128xf32>
    %6 = arith.addf %4, %5 : vector<8x128xf32>
    %7 = math.floor %6 : vector<8x128xf32>
    %cst_2 = arith.constant 0.000000e+00 : f32
    %cst_3 = arith.constant 4.000000e+00 : f32
    %8 = vector.broadcast %cst_2 : f32 to vector<8x128xf32>
    %9 = arith.maximumf %8, %7 : vector<8x128xf32>
    %10 = vector.broadcast %cst_3 : f32 to vector<8x128xf32>
    %11 = arith.minimumf %10, %9 : vector<8x128xf32>
    %12 = vector.broadcast %1 : f32 to vector<8x128xf32>
    %13 = arith.mulf %11, %12 : vector<8x128xf32>
    %c0_4 = arith.constant 0 : index
    %c0_5 = arith.constant 0 : index
    %14 = vector.load %arg3[%c0_4, %c0_5] : memref<8x128xf32, #tpu.memory_space<vmem>>, vector<8x128xf32>
    tpu.vector_store %arg3[%c0_4, %c0_5], %13 {strides = array<i32>} : memref<8x128xf32, #tpu.memory_space<vmem>>, vector<8x128xf32>,
    return
  }
  func.func @transform_0(%arg0: i32) -> i32 {
    %c0_i32 = arith.constant 0 : i32
    %c0_i32_0 = arith.constant 0 : i32
    return %c0_i32 : i32
  }
  func.func @transform_1(%arg0: i32) -> (i32, i32) {
    %c0_i32 = arith.constant 0 : i32
    %c0_i32_0 = arith.constant 0 : i32
    return %arg0, %c0_i32 : i32, i32
  }
  func.func @transform_2(%arg0: i32) -> (i32, i32) {
    %c0_i32 = arith.constant 0 : i32
    %c0_i32_0 = arith.constant 0 : i32
    return %arg0, %c0_i32 : i32, i32
  }
}

</mosaic_0001>

<bundles_post_ra>
// kernel: tpu_custom_call.1
= control target key start
LH: loop header
LB: loop body
LE: loop exit
PB: predicated region body
PF: predicated region fallthrough
CT: control target
= control target key end

     0   :  { %7 = vsyncpa [#allocation5], 0  ;;  %s689_s0 = inlined_call_operand.hbm [shape: f32[2], index: 0, kind: input, shape index: {}]   ;;  %s690_s1 = inlined_call_operand.hbm [shape: f32[16,128], index: 1, kind: input, shape index: {}]   ;;  %s691_s2 = inlined_call_operand.hbm [shape: f32[16,128], index: 2, kind: output, shape index: {}]  }
   0x1   :  { %8 = vsyncpa [#allocation3], 0 }
   0x2   :  { %10 = vsyncpa [#allocation3 + $0x1], 0 }
   0x3   :  { %11 = vsyncpa [#allocation4], 0 }
   0x4   :  { %13 = vsyncpa [#allocation4 + $0x1], 0  ;;  %s484_s9 = smov 0   ;;  %s486_s10 = smov 0  }
   0x5   :  { %s488_s11 = smov 0   ;;  %s490_s12 = smov 0  }
   0x6 LB: > { %s505_s13 = sadd.s32 4294967295, %s464_s12   ;;  %s279_s14 = sadd.s32 4294967294, %s464_s12   ;;  %s464_s12 = sphi %s490_s12, %s712_s12   ;;  %s460_s11 = sphi %s488_s11, %s711_s11   ;;  %s456_s10 = sphi %s486_s10, %s710_s10   ;;  %s452_s9 = sphi %s484_s9, %s709_s9  }
   0x7   : > { %p60_p0 = scmp.ne.s32.totalorder %s456_s10, %s452_s9  ;;  %p692_p1 = scmp.eq.s32.totalorder %s505_s13, 0 }
   0x8   : > { %p90_p3 = scmp.eq.s32.totalorder %s279_s14, 1  ;;  %p280_p5 = scmp.ge.s32.totalorder %s464_s12, 1 }
   0x9   : > { %p514_p4 = por %p692_p1, %p60_p0  ;;  %p97_p7 = scmp.lt.s32.totalorder %s464_s12, 3 }
   0xa   : > { %p519_p6 = por %p90_p3, %p60_p0  ;;  %s530_s18 = sadd.s32 1, %s464_s12  }
   0xb   : > { %s695_s15 = scalar_select %p514_p4, 1, 0 }
   0xc   : > { %s696_s16 = scalar_select %p519_p6, 1, 0 }
   0xd   : > { %p524_p8 = pnand %p280_p5, %p97_p7  ;;  %s44_s19 = ssub.s32 %s464_s12, %s530_s18 }
   0xe   : > { %s47_s20 = sadd.s32 1, %s460_s11  ;;  %p543_p12 = scmp.eq.s32.totalorder %s44_s19, 0 }
   0xf   : > { %p302_p10 = pneg %p524_p8  ;;  %p54_p13 = scmp.ne.s32.totalorder %s460_s11, %s456_s10 }
  0x10   : > { %p55_p0 = scmp.eq.s32.totalorder %s464_s12, 0  ;;  %p315_p3 = scmp.lt.s32.totalorder %s464_s12, 2 }
  0x11   : > { %p539_p11 = pnand %p302_p10, %p692_p1  ;;  %s351_s25 = scalar_lea.hbm %s689_s0, 16 }
  0x12   : > { %p352_p5 = scmp.ne.s32.totalorder %s689_s0, %s351_s25  ;;  %p358_p1 = scmp.lt.u32.totalorder %s351_s25, %s689_s0 }
  0x13   : > { %p353_p7 = pneg %p539_p11 }
  0x15   : > { %p354_p10 = pnand %p353_p7, %p352_p5 }
  0x17   : > { %p355_p9 = pneg %p354_p10 }
  0x19   : > { %p360_p2 = pnand %p358_p1, %p355_p9 }
  0x1b   : > { %363 = shalt.err (!%p360_p2)
}
  0x1c   : > { %s466_s30 = smov [#allocation2]   ;;  %p56_p1 = por %p55_p0, %p54_p13 }
  0x1d   : > { %305 = dma.hbm_to_smem (!%p539_p11), %s689_s0, 16, %s466_s30, [#allocation5]  }
  0x1e   : > { %s570_s5 = scalar_select %p543_p12, %s460_s11, %s47_s20  }
  0x1f   : > { %p700_p2 = scmp.eq.s32.totalorder %s505_s13, 1  ;;  %s119_s7 = sand.u32 1, %s460_s11  }
  0x20   : > { %s284_s8 = sshll.u32 %s464_s12, 7  ;;  %s283_s14 = sshll.u32 %s119_s7, 3 }
  0x21   : > { %p582_p9 = por %p700_p2, %p54_p13  ;;  %s591_s23 = scalar_lea.hbm %s690_s1, %s284_s8 }
  0x22   : > { %s123_s20 = scalar_lea.vmem [#allocation6], %s283_s14  ;;  %p595_p11 = pnand %p315_p3, %p56_p1 }
  0x23   : > { %s701_s6 = scalar_select %p582_p9, 1, 0 }
  0x24   : > { %s130_s22 = sshll.u32 %s123_s20, 4  ;;  %s120_s25 = scalar_lea.sflag [#allocation3], %s119_s7  ;;  %s599_s22 = int_to_ptr.vmem [resolvable:$true] %s130_s22 }
  0x25   : > { %s364_s26 = scalar_lea.hbm %s591_s23, 128  ;;  %p366_p13 = pneg %p595_p11 }
  0x26   : > { %p365_p12 = scmp.ne.s32.totalorder %s591_s23, %s364_s26  ;;  %s369_s29 = scalar_lea.hbm %s690_s1, 256 }
  0x27   : > { %p370_p3 = scmp.lt.u32.totalorder %s591_s23, %s690_s1  ;;  %p371_p7 = scmp.lt.u32.totalorder %s369_s29, %s364_s26 }
  0x28   : > { %p367_p0 = pnand %p366_p13, %p365_p12  ;;  %p373_p1 = scmp.lt.u32.totalorder %s364_s26, %s591_s23 }
  0x29   : > { %p372_p10 = por %p371_p7, %p370_p3 }
  0x2a   : > { %p368_p5 = pneg %p367_p0 }
  0x2b   : > { %p374_p2 = por %p373_p1, %p372_p10 }
  0x2d   : > { %p375_p6 = pnand %p374_p2, %p368_p5 }
  0x2f   : > { %378 = shalt.err (!%p375_p6)
}
  0x30   : > { %s379_s4 = scalar_lea.vmem %s599_s22, 128  ;;  %s467_s7 = smov [#allocation6]  }
  0x31   : > { %p380_p12 = scmp.ne.s32.totalorder %s599_s22, %s379_s4  ;;  %s384_s8 = sshll.u32 %s467_s7, 4  ;;  %s385_s8 = int_to_ptr.vmem [resolvable:$false] %s384_s8 }
  0x32   : > { %s386_s14 = scalar_lea.vmem %s385_s8, 256  ;;  %p387_p4 = scmp.lt.s32.totalorder %s599_s22, %s385_s8 }
  0x33   : > { %p382_p0 = pnand %p380_p12, %p366_p13  ;;  %p388_p3 = scmp.lt.s32.totalorder %s386_s14, %s379_s4 }
  0x35   : > { %p383_p9 = pneg %p382_p0  ;;  %p389_p7 = por %p388_p3, %p387_p4 }
  0x37   : > { %p390_p10 = pnand %p389_p7, %p383_p9 }
  0x39   : > { %393 = shalt.err (!%p390_p10)
}
  0x3a   : > { %309 = dma.hbm_to_vmem [thread:$0]  (!%p595_p11), %s591_s23, 128, %s599_s22, %s120_s25  }
  0x3b   : > { %139 = sbr.rel (%p524_p8) target bundleno = 106 (0x6a), region = 28  ;;  %p703_p6 = scmp.eq.s32.totalorder (!%p524_p8), %s505_s13, 0 }
  0x42   : > { %439 = dma.done.wait (%p703_p6), [#allocation5], 16   ;;  %p704_p13 = pmov %p703_p6 }
  0x43   : > { %s633_s19 = sand.u32 1, %s456_s10   ;;  %p705_p4 = scmp.ne.s32.totalorder %s695_s15, 0 }
  0x44   : > { %441 = vsyncadd (%p704_p13), [#allocation5], 4294967280  ;;  %s287_s21 = sshll.u32 %s633_s19, 3  ;;  %s146_s20 = scalar_lea.sflag [#allocation3], %s633_s19 }
  0x45   : > { %s149_s24 = scalar_lea.vmem [#allocation6], %s287_s21 }
  0x46   : > { %443 = dma.done.wait (%p705_p4), %s146_s20, 128  }
  0x47   : > { %445 = vsyncadd (%p705_p4), %s146_s20, 4294967168 }
  0x48   : > { %154 = sfence }
  0x49   : > { %s171_s17 = sld [smem:[#allocation2]]  ;;  %v173_v0 = vld [vmem:[%s149_s24] sm:$0xff]  ;;  %s289_s23 = sld [smem:[#allocation2 + $0x1]] }
  0x4a   : > { %s170_s22 = scalar_lea.vmem [#allocation7], %s287_s21  ;;  %s291_s26 = sshll.u32 %s505_s13, 7 }
  0x4b   : > { %s197_s25 = sshll.u32 %s170_s22, 4  ;;  %s647_s28 = scalar_lea.hbm %s691_s2, %s291_s26  ;;  %s642_s25 = int_to_ptr.vmem [resolvable:$true] %s197_s25 }
  0x4c   : > { %s184_s29 = scalar_lea.sflag [#allocation4], %s633_s19  ;;  %s394_s30 = scalar_lea.vmem %s642_s25, 128 }
  0x4d   : > { %p395_p8 = scmp.ne.s32.totalorder %s642_s25, %s394_s30  ;;  %p706_p9 = scmp.ne.s32.totalorder %s701_s6, 0 }
  0x4e   : > { %s468_s13 = smov [#allocation7]  }
  0x4f   : > { %v174_v1 = vstv %s171_s17  ;;  %v180_v6 = vstv %s289_s23  ;;  %p396_p11 = pnand %p395_p8, %p706_p9  ;;  %s398_s3 = sshll.u32 %s468_s13, 4  ;;  %s399_s3 = int_to_ptr.vmem [resolvable:$false] %s398_s3 }
  0x50   : > { %v175_v2 = vmul.f32 %v174_v1, %v173_v0  ;;  %s400_s4 = scalar_lea.vmem %s399_s3, 256  ;;  %p401_p1 = scmp.lt.s32.totalorder %s642_s25, %s399_s3 }
  0x51   : > { %p397_p5 = pneg %p396_p11  ;;  %p402_p2 = scmp.lt.s32.totalorder %s400_s4, %s394_s30 }
  0x52   : > { %v176_v3 = vadd.f32 0.5, %v175_v2 }
  0x53   : > { %p403_p12 = por %p402_p2, %p401_p1 }
  0x54   : > { %v177_v4 = vfloor.f32 %v176_v3 }
  0x55   : > { %p404_p0 = pnand %p403_p12, %p397_p5 }
  0x56   : > { %v178_v5 = vmax.f32 %v177_v4, 0.0 }
  0x58   : > { %v179_v7 = vmin.f32 %v178_v5, 4.0 }
  0x5a   : > { %v181_v8 = vmul.f32 %v180_v6, %v179_v7 }
  0x5c   : > { %182 = vst [vmem:[%s170_s22] sm:$0xff] %v181_v8 }
  0x5d   : > { %407 = shalt.err (!%p404_p0)
}
  0x5e   : > { %s408_s7 = scalar_lea.hbm %s647_s28, 128  ;;  %s412_s19 = scalar_lea.hbm %s691_s2, 256 }
  0x5f   : > { %p409_p3 = scmp.ne.s32.totalorder %s647_s28, %s408_s7  ;;  %p413_p6 = scmp.lt.u32.totalorder %s647_s28, %s691_s2 }
  0x60   : > { %p414_p13 = scmp.lt.u32.totalorder %s412_s19, %s408_s7  ;;  %p416_p8 = scmp.lt.u32.totalorder %s408_s7, %s647_s28 }
  0x61   : > { %p410_p7 = pnand %p409_p3, %p706_p9 }
  0x62   : > { %p415_p4 = por %p414_p13, %p413_p6 }
  0x63   : > { %p411_p10 = pneg %p410_p7 }
  0x64   : > { %p417_p11 = por %p416_p8, %p415_p4 }
  0x66   : > { %p418_p5 = pnand %p417_p11, %p411_p10 }
  0x68   : > { %421 = shalt.err (!%p418_p5)
}
  0x69   : > { %300 = dma.vmem_to_hbm [thread:$0]  (%p706_p9), %s642_s25, 128, %s647_s28, %s184_s29  }
  0x6a PF: > { %s209_s24 = sand.u32 1, %s452_s9   ;;  %p707_p1 = scmp.ne.s32.totalorder %s696_s16, 0 }
  0x6b   : > { %p708_p2 = scmp.ge.s32.totalorder %s464_s12, 2  ;;  %s210_s17 = scalar_lea.sflag [#allocation4], %s209_s24 }
  0x6d   : > { %p311_p12 = pnand %p708_p2, %p707_p1 }
  0x6f   : > { %447 = dma.done.wait (!%p311_p12), %s210_s17, 128  }
  0x70   : > { %449 = vsyncadd (!%p311_p12), %s210_s17, 4294967168  ;;  %p16_p0 = scmp.ge.s32.totalorder %s530_s18, 4   ;;  %s709_s9 = smov %s456_s10 }
  0x71   : > { %s710_s10 = smov %s460_s11  ;;  %s711_s11 = smov %s570_s5 }
  0x72   : > { %s712_s12 = smov %s530_s18  ;;  %18 = sbr.rel (!%p16_p0) target bundleno = 6 (0x6), region = 78 }
  0x79   :  { %215 = vsyncpa [#allocation3], 1 }
  0x7a   :  { %217 = vsyncpa [#allocation3 + $0x1], 1 }
  0x7b   :  { %218 = vsyncpa [#allocation4], 1 }
  0x7c   :  { %220 = vsyncpa [#allocation4 + $0x1], 1 }
  0x7d   :  { %221 = vsyncpa [#allocation5], 1 }
  0x7e   :  { %223 = vsyncpa [#allocation5 + $0x1], 1 }

</bundles_post_ra>
